<compile_context>
chip_gen: v7x
topology: tpu7x:2x2x1
jax: 0.10.0
libtpu: 0.0.40
codegen_flags: <defaults>
</compile_context>

<pallas_src>
import jax
import jax.numpy as jnp
from jax.experimental import pallas as pl
from jax.experimental.pallas import tpu as pltpu


def _affine_kernel(x_ref, wt_ref, bt_ref, o_ref):
    # x_ref : (TB, D)         batch tile, pipelined
    # wt_ref: (OUT_PAD, D)    folded weights (transposed), VMEM-resident
    # bt_ref: (OUT_PAD, 1)    folded bias (transposed),   VMEM-resident
    # o_ref : (OUT_PAD, TB)   batch in lanes -> unmasked full-lane stores
    acc = jax.lax.dot_general(
        wt_ref[...], x_ref[...],
        dimension_numbers=(((1,), (1,)), ((), ())),   # contract D on both
        preferred_element_type=jnp.float32,
    )
    o_ref[...] = (acc + bt_ref[...]).astype(o_ref.dtype)


def classifier_forward(x, params, *, tb=8192, min_pallas_batch=1024):
    """Forward pass equivalent to classifier3(classifier2(classifier1(x)))."""
    (w1, b1), (w2, b2), (w3, b3) = params
    B, D = x.shape
    out_dim = w3.shape[1]

    # --- Fold the activation-free 3-layer stack into one affine map (f32, XLA side).
    w_eff = w1 @ w2 @ w3                          # (D, out_dim)
    b_eff = b1 @ w2 @ w3 + b2 @ w3 + b3           # (1, out_dim)

    # --- Small-batch fallback: launch/fold overhead dominates; one fused dot wins.
    if B < min_pallas_batch:
        return x @ w_eff + b_eff

    # --- Transposed, sublane-padded weights/bias (works for any out_dim).
    out_pad = max(8, ((out_dim + 7) // 8) * 8)
    wt = jnp.pad(w_eff.T, ((0, out_pad - out_dim), (0, 0)))   # (out_pad, D)
    bt = jnp.pad(b_eff.T, ((0, out_pad - out_dim), (0, 0)))   # (out_pad, 1)
    if x.dtype == jnp.bfloat16:
        wt = wt.astype(jnp.bfloat16)   # keep f32 accumulation on the MXU

    # --- Batch tile: multiple of 128 (lane-dense transposed output), capped at
    # cdiv(B, 2) so large batches give >= 2 grid steps (both v7x TensorCores).
    TB = min(tb, pl.cdiv(B, 2))
    TB = max(128, ((TB + 127) // 128) * 128)
    grid = (pl.cdiv(B, TB),)          # no host-side pad of x; ragged tail is masked

    itemsize = jnp.dtype(x.dtype).itemsize
    cost = pl.CostEstimate(
        flops=2 * B * D * out_pad,
        transcendentals=0,
        bytes_accessed=B * D * itemsize + B * out_pad * 4
        + out_pad * D * jnp.dtype(wt.dtype).itemsize,
    )

    out_t = pl.pallas_call(
        _affine_kernel,
        out_shape=jax.ShapeDtypeStruct((out_pad, B), jnp.float32),
        grid=grid,
        in_specs=[
            pl.BlockSpec((TB, D), lambda i: (i, 0)),        # x tile, pipelined
            pl.BlockSpec((out_pad, D), lambda i: (0, 0)),   # folded weights, resident
            pl.BlockSpec((out_pad, 1), lambda i: (0, 0)),   # folded bias, resident
        ],
        out_specs=pl.BlockSpec((out_pad, TB), lambda i: (0, i)),
        compiler_params=pltpu.CompilerParams(
            dimension_semantics=("parallel",),              # shard batch across TCs
        ),
        cost_estimate=cost,
    )(x, wt, bt)

    # Tiny transpose back to the PyTorch layout; pad rows sliced off.
    return out_t[:out_dim, :].T


def init_params(key, dim, out_dim=2):
    """Deterministic init mimicking torch.nn.Linear shapes.

    Weights are stored as (in_features, out_features) = W_torch.T so the math
    is x @ W + b, identical to nn.Linear's forward.
    """
    def linear(k, fan_in, fan_out):
        kw, kb = jax.random.split(k)
        bound = 1.0 / jnp.sqrt(fan_in)
        w = jax.random.uniform(kw, (fan_in, fan_out), jnp.float32, -bound, bound)
        b = jax.random.uniform(kb, (1, fan_out), jnp.float32, -bound, bound)
        return w, b

    k1, k2, k3 = jax.random.split(key, 3)
    return (
        linear(k1, dim, 32),
        linear(k2, 32, 16),
        linear(k3, 16, out_dim),
    )


if __name__ == "__main__":
    key = jax.random.PRNGKey(0)
    kx, kp = jax.random.split(key)

    DIM, OUT = 64, 2
    params = init_params(kp, DIM, OUT)
    (w1, b1), (w2, b2), (w3, b3) = params

    def ref_fwd(xx):
        return ((xx @ w1 + b1) @ w2 + b2) @ w3 + b3

    # 1) Modest batch forced through the Pallas path (2 grid steps of TB=128).
    B = 256
    x = jax.random.normal(kx, (B, DIM), dtype=jnp.float32)
    y = classifier_forward(x, params, min_pallas_batch=0)
    y = jax.block_until_ready(y)
    assert y.shape == (B, OUT)
    # Folding changes FP association order slightly -> modest tolerance.
    assert jnp.allclose(y, ref_fwd(x), atol=1e-4, rtol=1e-4)

    # 2) Tiny batch through the small-batch XLA fallback (default threshold).
    xs = jax.random.normal(kx, (8, DIM), dtype=jnp.float32)
    ys = jax.block_until_ready(classifier_forward(xs, params))
    assert ys.shape == (8, OUT)
    assert jnp.allclose(ys, ref_fwd(xs), atol=1e-4, rtol=1e-4)

    print("KERNEL_OK")
</pallas_src>

<mosaic_0001>
module attributes {stable_mosaic.version = 11 : i64} {
  func.func @_affine_kernel(%arg0: i32, %arg1: memref<128x64xf32, #tpu.memory_space<vmem>>, %arg2: memref<8x64xf32, #tpu.memory_space<vmem>>, %arg3: memref<8x1xf32, #tpu.memory_space<vmem>>, %arg4: memref<8x128xf32, #tpu.memory_space<vmem>>) attributes {dimension_semantics = [#tpu.dimension_semantics<parallel>], iteration_bounds = array<i64: 2>, scalar_prefetch = 0 : i64, scratch_operands = 0 : i64, tpu.core_type = #tpu.core_type<tc>, window_params = [{transform_indices = @transform_0, window_bounds = array<i64: 128, 64>}, {pipeline_mode = #tpu.pipeline_mode<synchronous>, transform_indices = @transform_1, window_bounds = array<i64: 8, 64>}, {pipeline_mode = #tpu.pipeline_mode<synchronous>, transform_indices = @transform_2, window_bounds = array<i64: 8, 1>}, {transform_indices = @transform_3, window_bounds = array<i64: 8, 128>}]} {
    %c0 = arith.constant 0 : index
    %c0_0 = arith.constant 0 : index
    %0 = vector.load %arg2[%c0, %c0_0] : memref<8x64xf32, #tpu.memory_space<vmem>>, vector<8x64xf32>
    %c0_1 = arith.constant 0 : index
    %c0_2 = arith.constant 0 : index
    %1 = vector.load %arg1[%c0_1, %c0_2] : memref<128x64xf32, #tpu.memory_space<vmem>>, vector<128x64xf32>
    %cst = arith.constant dense<0.000000e+00> : vector<8x128xf32>
    %2 = tpu.matmul %0, %1, %cst {dimension_numbers = #tpu.dot_dimension_numbers<[1], [1], [0], [0], [0, 0, 1, 0], [], []>} : vector<8x64xf32>, vector<128x64xf32>, vector<8x128xf32> -> vector<8x128xf32>
    %c0_3 = arith.constant 0 : index
    %c0_4 = arith.constant 0 : index
    %3 = vector.load %arg3[%c0_3, %c0_4] : memref<8x1xf32, #tpu.memory_space<vmem>>, vector<8x1xf32>
    %4 = vector.broadcast %3 : vector<8x1xf32> to vector<8x128xf32>
    %5 = arith.addf %2, %4 : vector<8x128xf32>
    %c0_5 = arith.constant 0 : index
    %c0_6 = arith.constant 0 : index
    %6 = vector.load %arg4[%c0_5, %c0_6] : memref<8x128xf32, #tpu.memory_space<vmem>>, vector<8x128xf32>
    tpu.vector_store %arg4[%c0_5, %c0_6], %5 {strides = array<i32>} : memref<8x128xf32, #tpu.memory_space<vmem>>, vector<8x128xf32>,
    return
  }
  func.func @transform_0(%arg0: i32) -> (i32, i32) {
    %c0_i32 = arith.constant 0 : i32
    %c0_i32_0 = arith.constant 0 : i32
    return %arg0, %c0_i32 : i32, i32
  }
  func.func @transform_1(%arg0: i32) -> (i32, i32) {
    %c0_i32 = arith.constant 0 : i32
    %c0_i32_0 = arith.constant 0 : i32
    %c0_i32_1 = arith.constant 0 : i32
    return %c0_i32, %c0_i32_0 : i32, i32
  }
  func.func @transform_2(%arg0: i32) -> (i32, i32) {
    %c0_i32 = arith.constant 0 : i32
    %c0_i32_0 = arith.constant 0 : i32
    %c0_i32_1 = arith.constant 0 : i32
    return %c0_i32, %c0_i32_0 : i32, i32
  }
  func.func @transform_3(%arg0: i32) -> (i32, i32) {
    %c0_i32 = arith.constant 0 : i32
    %c0_i32_0 = arith.constant 0 : i32
    return %c0_i32, %arg0 : i32, i32
  }
}

</mosaic_0001>

<bundles_post_ra>
// kernel: tpu_custom_call.1
= control target key start
LH: loop header
LB: loop body
LE: loop exit
PB: predicated region body
PF: predicated region fallthrough
CT: control target
= control target key end

     0   :  { %8 = vsyncpa [#allocation3], 0  ;;  %s781_s0 = inlined_call_operand.vmem [shape: f32[256,64], index: 0, kind: input, shape index: {}]   ;;  %s782_s1 = inlined_call_operand.vmem [shape: f32[8,64], index: 1, kind: input, shape index: {}]   ;;  %s783_s2 = inlined_call_operand.vmem [shape: f32[8,1], index: 2, kind: input, shape index: {}]   ;;  %s784_s3 = inlined_call_operand.hbm [shape: f32[8,256], index: 3, kind: output, shape index: {}]  }
   0x1   :  { %10 = vsyncpa [#allocation3 + $0x1], 0  ;;  %s635_s12 = smov 0   ;;  %s637_s13 = smov 0  }
   0x2   :  { %s639_s14 = smov 0   ;;  %s641_s15 = smov 0  }
   0x3 LB: > { %s656_s16 = sadd.s32 4294967295, %s608_s15   ;;  %s390_s17 = sadd.s32 4294967294, %s608_s15   ;;  %s608_s15 = sphi %s641_s15, %s792_s15   ;;  %s604_s14 = sphi %s639_s14, %s791_s14   ;;  %s600_s13 = sphi %s637_s13, %s790_s13   ;;  %s596_s12 = sphi %s635_s12, %s789_s12  }
   0x4   : > { %s660_s18 = sadd.s32 1, %s608_s15   ;;  %s91_s19 = sadd.s32 1, %s604_s14 }
   0x5   : > { %s88_s20 = ssub.s32 %s608_s15, %s660_s18  ;;  %p101_p0 = scmp.ne.s32.totalorder %s604_s14, %s600_s13 }
   0x6   : > { %p89_p1 = scmp.eq.s32.totalorder %s88_s20, 0  ;;  %p102_p2 = scmp.eq.s32.totalorder %s656_s16, 1 }
   0x7   : > { %p107_p3 = scmp.ne.s32.totalorder %s600_s13, %s596_s12  ;;  %p108_p4 = scmp.eq.s32.totalorder %s390_s17, 1 }
   0x8   : > { %s671_s21 = scalar_select %p89_p1, %s604_s14, %s91_s19  }
   0x9   : > { %p673_p5 = por %p102_p2, %p101_p0  ;;  %p677_p6 = por %p108_p4, %p107_p3 }
   0xa   : > { %p393_p7 = scmp.ge.s32.totalorder %s608_s15, 1  ;;  %p141_p8 = scmp.lt.s32.totalorder %s608_s15, 3 }
   0xc   : > { %p142_p9 = pnand %p393_p7, %p141_p8 }
   0xd   : > { %s395_s24 = sshll.u32 (!%p142_p9), %s656_s16, 4  ;;  %v610_v0 = vmov (!%p142_p9), 0.0|0.0   ;;  %vm611_vm0 = vmmov (!%p142_p9), 0   ;;  %v612_v1 = vmov (!%p142_p9), 0.0   ;;  %v188_v2 = vld [vmem:[%s783_s2] sm:$0xff] (!%p142_p9)  ;;  %v613_v3 = vmov (!%p142_p9), 0  }
   0xe   : > { %145 = sbr.rel (%p142_p9) target bundleno = 318 (0x13e), region = 32  ;;  %470 = vmatprep.subr.bf16.mxu0 (!%p142_p9), %v610_v0  ;;  %p166_p10 = scmp.lt.s32.totalorder (!%p142_p9), %s395_s24, 31  ;;  %467 = vmatprep.mubr.msk.f32.mxu0 (!%p142_p9), %vm611_vm0, %v612_v1  ;;  %vm194_vm1 = vcmask (!%p142_p9), 523264   ;;  %v171_v29 = vld [vmem:[%s782_s1] sm:$0xff] (!%p142_p9) }
   0xf   : > { %545 = vset.pattern.permute.xlu0 (!%p142_p9), %v613_v3  ;;  %vm696_vm2 = vmpackc.low (!%p142_p9), %vm194_vm1, %vm194_vm1  ;;  %s162_s6 = sand.u32 (!%p142_p9), 1, %s600_s13   ;;  %s415_s8 = sshll.u32 (!%p142_p9), %s656_s16, 7 }
  0x10   : > { %191 = vperm.xlu0 (!%p142_p9), %545, %v188_v2   ;;  %s394_s7 = sshll.u32 (!%p142_p9), %s162_s6, 3  ;;  %s739_s19 = scalar_lea.hbm (!%p142_p9), %s784_s3, %s415_s8 }
  0x11   : > { %s164_s9 = scalar_lea.vmem (!%p142_p9), [#allocation2], %s394_s7  ;;  %s318_s20 = scalar_lea.sflag (!%p142_p9), [#allocation3], %s162_s6 }
  0x12   : > { %s331_s10 = sshll.u32 (!%p142_p9), %s164_s9, 4  ;;  %s614_s16 = smov (!%p142_p9), [#allocation2]   ;;  %s741_s10 = int_to_ptr.vmem [resolvable:$true] %s331_s10 }
  0x13   : > { %s550_s25 = sshll.u32 (!%p142_p9), %s614_s16, 4  ;;  %s551_s25 = int_to_ptr.vmem [resolvable:$false] %s550_s25 }
  0x14   : > { %s552_s26 = scalar_lea.vmem (!%p142_p9), %s551_s25, 256  ;;  %p553_p0 = scmp.lt.s32.totalorder (!%p142_p9), %s741_s10, %s551_s25 }
  0x15   : > { %s794_s24 = smov (!%p166_p10, %s395_s24), 31 }
  0x16   : > { %s396_s27 = sshll.u32 %s794_s24, 3  ;;  %s546_s24 = scalar_lea.vmem %s741_s10, 128 }
  0x17   : > { %s690_s30 = scalar_lea.vmem %s781_s0, %s396_s27  ;;  %p547_p11 = scmp.ne.s32.totalorder %s741_s10, %s546_s24 }
  0x18   : > { %v172_v4 = vld [vmem:[%s690_s30] sm:$0xff]  ;;  %v173_v5 = vld [vmem:[%s690_s30 + $0x8] sm:$0xff]  ;;  %v174_v8 = vld [vmem:[%s690_s30 + $0x10] sm:$0xff]  ;;  %p554_p1 = scmp.lt.s32.totalorder %s552_s26, %s546_s24 }
  0x19   : > { %v471_v7 = vpack.c.bf16 %v173_v5, %v172_v4  ;;  %v175_v9 = vld [vmem:[%s690_s30 + $0x18] sm:$0xff]  ;;  %v176_v11 = vld [vmem:[%s690_s30 + $0x20] sm:$0xff]  ;;  %v177_v12 = vld [vmem:[%s690_s30 + $0x28] sm:$0xff]  ;;  %p548_p12 = pnand %p547_p11, %p673_p5 }
  0x1a   : > { %v475_v10 = vpack.c.bf16 %v175_v9, %v174_v8  ;;  %v479_v13 = vpack.c.bf16 %v177_v12, %v176_v11  ;;  %v178_v14 = vld [vmem:[%s690_s30 + $0x30] sm:$0xff]  ;;  %v179_v15 = vld [vmem:[%s690_s30 + $0x38] sm:$0xff]  ;;  %v180_v17 = vld [vmem:[%s690_s30 + $0x40] sm:$0xff]  ;;  %p555_p2 = por %p554_p1, %p553_p0 }
  0x1b   : > { %473 = vmatpush3.bf16.xpose.msk.msra.mxu0 %vm696_vm2, %v471_v7  ;;  %v483_v16 = vpack.c.bf16 %v179_v15, %v178_v14  ;;  %v181_v18 = vld [vmem:[%s690_s30 + $0x48] sm:$0xff]  ;;  %v182_v20 = vld [vmem:[%s690_s30 + $0x50] sm:$0xff]  ;;  %v183_v21 = vld [vmem:[%s690_s30 + $0x58] sm:$0xff]  ;;  %p549_p13 = pneg %p548_p12 }
  0x1c   : > { %474 = vmatprep.subr.bf16.mxu0 %v610_v0  ;;  %v487_v19 = vpack.c.bf16 %v181_v18, %v180_v17  ;;  %v491_v22 = vpack.c.bf16 %v183_v21, %v182_v20  ;;  %v184_v23 = vld [vmem:[%s690_s30 + $0x60] sm:$0xff]  ;;  %v185_v24 = vld [vmem:[%s690_s30 + $0x68] sm:$0xff]  ;;  %v186_v26 = vld [vmem:[%s690_s30 + $0x70] sm:$0xff] }
  0x1d   : > { %v495_v25 = vpack.c.bf16 %v185_v24, %v184_v23  ;;  %v187_v27 = vld [vmem:[%s690_s30 + $0x78] sm:$0xff]  ;;  %p556_p3 = pnand %p555_p2, %p549_p13 }
  0x1e   : > { %v499_v28 = vpack.c.bf16 %v187_v27, %v186_v26 }
  0x23   : > { %477 = vmatpush3.bf16.xpose.msk.msra.mxu0 %vm696_vm2, %v475_v10 }
  0x24   : > { %478 = vmatprep.subr.bf16.mxu0 %v610_v0 }
  0x2b   : > { %481 = vmatpush3.bf16.xpose.msk.msra.mxu0 %vm696_vm2, %v479_v13 }
  0x2c   : > { %482 = vmatprep.subr.bf16.mxu0 %v610_v0 }
  0x33   : > { %485 = vmatpush3.bf16.xpose.msk.msra.mxu0 %vm696_vm2, %v483_v16 }
  0x34   : > { %486 = vmatprep.subr.bf16.mxu0 %v610_v0 }
  0x3b   : > { %489 = vmatpush3.bf16.xpose.msk.msra.mxu0 %vm696_vm2, %v487_v19 }
  0x3c   : > { %490 = vmatprep.subr.bf16.mxu0 %v610_v0 }
  0x43   : > { %493 = vmatpush3.bf16.xpose.msk.msra.mxu0 %vm696_vm2, %v491_v22 }
  0x44   : > { %494 = vmatprep.subr.bf16.mxu0 %v610_v0 }
  0x4b   : > { %497 = vmatpush3.bf16.xpose.msk.msra.mxu0 %vm696_vm2, %v495_v25 }
  0x4c   : > { %498 = vmatprep.subr.bf16.mxu0 %v610_v0 }
  0x53   : > { %501 = vmatpush3.bf16.xpose.msk.msra.mxu0 %vm696_vm2, %v499_v28 }
  0x5a   : > { %468 = vmatmul.mubr.msk.f32.vlgmr.msra.gmra.mrb[0].mxu0 %vm194_vm1, %v171_v29 }
  0x8f   : > { %v192_v30 = vpop.permute.xlu0 %191 }
 0x12d   : > { %v312_v31 = vpop.f32.mrb[0].mxu0 }
 0x12e   : > { %v313_v32 = vadd.f32 %v312_v31, %v192_v30  ;;  %v469_v33 = vpop.f32.mrb[1].mxu0 }
 0x130   : > { %316 = vst [vmem:[%s164_s9] sm:$0xff] %v313_v32 }
 0x131   : > { %559 = shalt.err (!%p556_p3)
}
 0x132   : > { %s560_s27 = scalar_lea.hbm %s739_s19, 128  ;;  %s564_s30 = scalar_lea.hbm %s784_s3, 256 }
 0x133   : > { %p561_p4 = scmp.ne.s32.totalorder %s739_s19, %s560_s27  ;;  %p565_p9 = scmp.lt.u32.totalorder %s739_s19, %s784_s3 }
 0x134   : > { %p566_p10 = scmp.lt.u32.totalorder %s564_s30, %s560_s27  ;;  %p568_p12 = scmp.lt.u32.totalorder %s560_s27, %s739_s19 }
 0x135   : > { %p562_p7 = pnand %p561_p4, %p673_p5 }
 0x136   : > { %p567_p11 = por %p566_p10, %p565_p9 }
 0x137   : > { %p563_p8 = pneg %p562_p7 }
 0x138   : > { %p569_p13 = por %p568_p12, %p567_p11 }
 0x13a   : > { %p570_p0 = pnand %p569_p13, %p563_p8 }
 0x13c   : > { %573 = shalt.err (!%p570_p0)
}
 0x13d   : > { %502 = dma.vmem_to_hbm [thread:$0]  (%p673_p5), %s741_s10, 128, %s739_s19, %s318_s20  }
 0x13e PF: > { %p508_p1 = scmp.ge.s32.totalorder %s608_s15, 2  ;;  %s343_s6 = sand.u32 1, %s596_s12  }
 0x13f   : > { %s344_s7 = scalar_lea.sflag [#allocation3], %s343_s6 }
 0x140   : > { %p505_p2 = pnand %p508_p1, %p677_p6 }
 0x142   : > { %591 = dma.done.wait (!%p505_p2), %s344_s7, 128  }
 0x143   : > { %593 = vsyncadd (!%p505_p2), %s344_s7, 4294967168  ;;  %p13_p3 = scmp.ge.s32.totalorder %s660_s18, 4   ;;  %s789_s12 = smov %s600_s13 }
 0x144   : > { %s790_s13 = smov %s604_s14  ;;  %s791_s14 = smov %s671_s21 }
 0x145   : > { %s792_s15 = smov %s660_s18  ;;  %15 = sbr.rel (!%p13_p3) target bundleno = 3 (0x3), region = 67 }
 0x14c   :  { %349 = vsyncpa [#allocation3], 1 }
 0x14d   :  { %351 = vsyncpa [#allocation3 + $0x1], 1 }

</bundles_post_ra>
